<compile_context>
chip_gen: v6e
topology: v6e:2x2x1
jax: 0.10.0
libtpu: 0.0.40
codegen_flags: <defaults>
</compile_context>

<pallas_src>
import jax
import jax.numpy as jnp
from jax.experimental import pallas as pl
from jax.experimental.pallas import tpu as pltpu

B, T, C = 2, 8, 4            # batch, sequence_length, input_channels
HEADS, DIM = 2, 4            # LiteMLA(heads=2, dim=4)
TOTAL = HEADS * DIM          # 8
QKV_CH = 3 * TOTAL           # 24
SCALES = (1, 3, 5)
NS = len(SCALES)             # 3
LANES = NS * B * T           # 48 lanes: lane = scale*16 + batch*8 + t
PADMAX = max(SCALES) // 2    # 2
EPS_BN = 1e-5                # BatchNorm eps

# ---------------------------------------------------------------------------
# Packed-parameter layout: every param is a 2-D block at an 8-aligned row offset
# inside a single (PACK_ROWS, 48) f32 buffer -> one DMA for all weights.
# ---------------------------------------------------------------------------
_PARAM_SHAPES = {
    "fc1M":    (B * T, B * T),    # block-diag(fc1.weight^T) over batch
    "fc1b":    (1, B * T),
    "qkvw":    (QKV_CH, C),
    "qkvb":    (QKV_CH, 1),
    "tap_m2":  (QKV_CH, LANES),   # depthwise taps (shift masks folded in, per scale)
    "tap_m1":  (QKV_CH, LANES),
    "tap_0":   (QKV_CH, LANES),
    "tap_p1":  (QKV_CH, LANES),
    "tap_p2":  (QKV_CH, LANES),
    "aggb":    (QKV_CH, LANES),   # depthwise bias, per scale
    "segmask": (LANES, LANES),    # block-diag (scale,batch) segment mask (0/1)
    "projw":   (C, QKV_CH),
    "projb":   (C, 1),
    "nw":      (C, T),            # norm affine in (C, T) layout
    "nb":      (C, T),
}
_PARAM_OFFSET = {}
_row = 0
for _name, (_h, _w) in _PARAM_SHAPES.items():
    _PARAM_OFFSET[_name] = _row
    _row += ((_h + 7) // 8) * 8   # keep every block 8-sublane aligned
PACK_ROWS, PACK_COLS = _row, LANES


def _pslice(p_ref, name):
    h, w = _PARAM_SHAPES[name]
    r0 = _PARAM_OFFSET[name]
    return p_ref[r0:r0 + h, 0:w]


# ---------------------------------------------------------------------------
# the Pallas kernel: full TimeMixing forward, batched over batch/scale on lanes
# ---------------------------------------------------------------------------
def time_mixing_kernel(x_ref, p_ref, out_ref, cat_ref):
    f32 = jnp.float32
    get = lambda name: _pslice(p_ref, name)

    x_ct = x_ref[...]                                     # (C, B*T) = (4, 16)

    # fc1 over the time axis (block-diagonal weight handles both batches in 1 dot).
    # TODO(synk): dropout(p=0.1) is identity here (inference / eval semantics).
    h = jnp.dot(x_ct, get("fc1M"), preferred_element_type=f32) + get("fc1b")
    h = jnp.maximum(h, 0.0)                               # (4, 16)   == relu(fc1(x^T))

    # qkv pointwise conv (k=1) + ReLU.
    qkv = jnp.dot(get("qkvw"), h, preferred_element_type=f32) + get("qkvb")
    qkv = jnp.maximum(qkv, 0.0)                           # (24, 16)

    # All 3 depthwise scales at once on a (24, 48) slab; lane = scale*16 + b*8 + t.
    # Zero-pad / batch-boundary masks are pre-folded into the tap weights, so each
    # tap is a single multiply-add.  The shifted views are static lane slices of a
    # once-built padded+tiled value (no per-tap concatenates, no roll-sign issues).
    zpad = jnp.zeros((QKV_CH, PADMAX), f32)
    qkv3p = jnp.concatenate([zpad, qkv, qkv, qkv, zpad], axis=1)   # (24, 52)
    tap = lambda o: qkv3p[:, PADMAX + o: PADMAX + o + LANES]        # (24, 48)
    conv = (get("aggb")
            + get("tap_m2") * tap(-2) + get("tap_m1") * tap(-1)
            + get("tap_0") * tap(0)
            + get("tap_p1") * tap(1) + get("tap_p2") * tap(2))
    qs = jnp.maximum(conv, 0.0)                           # (24, 48)
    # (the extra relu on q/k in the PyTorch module is a no-op: qs is already >= 0)

    # Linear attention: per head, both matmuls are batched over (scale, batch) via a
    # block-diagonal (48, 48) segment mask between kv and q@kv.
    segmask = get("segmask")                              # (48, 48) of {0, 1}
    for hh in range(HEADS):
        q_h = qs[DIM * hh: DIM * (hh + 1), :]                         # (4, 48)
        k_h = qs[TOTAL + DIM * hh: TOTAL + DIM * (hh + 1), :]         # (4, 48)
        v_h = qs[2 * TOTAL + DIM * hh: 2 * TOTAL + DIM * (hh + 1), :] # (4, 48)
        kv = jax.lax.dot_general(k_h, v_h, (((0,), (0,)), ((), ())),
                                 preferred_element_type=f32)          # (48, 48)
        kv = kv * segmask                                 # keep same (scale,batch) block
        att = jnp.dot(q_h, kv, preferred_element_type=f32)            # (4, 48)
        # scatter into the PyTorch cat layout (rows = scale*8 + head*4 + d)
        for z in range(NS):
            cat_ref[8 * z + 4 * hh: 8 * z + 4 * hh + DIM, :] = \
                att[:, 16 * z: 16 * z + 16]

    # proj pointwise conv (k=1) + ReLU, residual against the ORIGINAL input.
    attn = jnp.dot(get("projw"), cat_ref[...], preferred_element_type=f32) + get("projb")
    attn = jnp.maximum(attn, 0.0)                         # (4, 16)
    y = x_ct + attn                                       # (4, 16)

    # TODO(synk): BatchNorm1d((T, C)) as written in the PyTorch module would not run;
    # implemented as training-mode batch-norm over the batch dim with (T, C) affine.
    y0 = y[:, :T]
    y1 = y[:, T:]
    mean = (y0 + y1) * 0.5
    d0 = y0 - mean
    d1 = y1 - mean
    inv = jax.lax.rsqrt((d0 * d0 + d1 * d1) * 0.5 + EPS_BN)
    nw = get("nw")
    nb = get("nb")
    o0 = d0 * inv * nw + nb
    o1 = d1 * inv * nw + nb
    out_ref[...] = jnp.concatenate([o0, o1], axis=1)      # single full-width store


# ---------------------------------------------------------------------------
# wrapper: layout changes + single pallas_call (no grid; everything fits in VMEM)
# ---------------------------------------------------------------------------
@jax.jit
def time_mixing(x, packed_params):
    x_ct = jnp.transpose(x, (2, 0, 1)).reshape(C, B * T)          # (C, B*T)
    vmem = pl.BlockSpec(memory_space=pltpu.MemorySpace.VMEM)
    out_ct = pl.pallas_call(
        time_mixing_kernel,
        out_shape=jax.ShapeDtypeStruct((C, B * T), jnp.float32),
        in_specs=[vmem, vmem],
        out_specs=vmem,
        scratch_shapes=[pltpu.VMEM((QKV_CH, B * T), jnp.float32)],   # cat scratch
    )(x_ct, packed_params)
    return jnp.transpose(out_ct.reshape(C, B, T), (1, 2, 0))       # back to (B, T, C)


# ---------------------------------------------------------------------------
# torch-convention parameter init + host-side preprocessing & packing
# ---------------------------------------------------------------------------
def init_params(key):
    ks = jax.random.split(key, 12)
    p = {}
    fc1_w = 0.3 * jax.random.normal(ks[0], (T, T), jnp.float32)        # torch Linear (out,in)
    p["fc1w_t"] = fc1_w.T                                              # used as x @ W^T
    p["fc1b"] = 0.1 * jax.random.normal(ks[1], (1, T), jnp.float32)
    p["qkvw"] = 0.3 * jax.random.normal(ks[2], (QKV_CH, C), jnp.float32)   # Conv1d k=1 weight
    p["qkvb"] = 0.1 * jax.random.normal(ks[3], (QKV_CH, 1), jnp.float32)
    for i, ksz in enumerate(SCALES):
        p[f"dw{ksz}"] = 0.3 * jax.random.normal(ks[4 + 2 * i], (QKV_CH, ksz), jnp.float32)
        p[f"db{ksz}"] = 0.1 * jax.random.normal(ks[5 + 2 * i], (QKV_CH, 1), jnp.float32)
    p["projw"] = 0.3 * jax.random.normal(ks[10], (C, QKV_CH), jnp.float32)
    p["projb"] = 0.1 * jax.random.normal(ks[11], (C, 1), jnp.float32)
    p["nw"] = jnp.ones((T, C), jnp.float32)    # norm affine defaults: weight=1, bias=0
    p["nb"] = jnp.zeros((T, C), jnp.float32)
    return p


def prepare_params(p):
    """Build the kernel-layout parameter dict from torch-convention params."""
    fc1wt = p["fc1w_t"]
    fc1M = jnp.zeros((B * T, B * T), jnp.float32)
    fc1M = fc1M.at[:T, :T].set(fc1wt).at[T:, T:].set(fc1wt)
    kp = {
        "fc1M": fc1M,
        "fc1b": jnp.tile(p["fc1b"], (1, B)),
        "qkvw": p["qkvw"],
        "qkvb": p["qkvb"],
        "aggb": jnp.concatenate(
            [jnp.tile(p[f"db{k}"], (1, B * T)) for k in SCALES], axis=1),
        "projw": p["projw"],
        "projb": p["projb"],
        "nw": p["nw"].T,                                   # (C, T)
        "nb": p["nb"].T,
    }
    # depthwise tap weights with the zero-padding shift masks folded in
    t_idx = jnp.arange(T)
    for o in range(-PADMAX, PADMAX + 1):
        valid = ((t_idx + o >= 0) & (t_idx + o < T)).astype(jnp.float32)   # (T,)
        valid_bt = jnp.tile(valid, B)                                      # (B*T,)
        blocks = []
        for ksz in SCALES:
            pad = ksz // 2
            if abs(o) <= pad:
                w_col = p[f"dw{ksz}"][:, o + pad]                          # (24,)
                blocks.append(w_col[:, None] * valid_bt[None, :])
            else:
                blocks.append(jnp.zeros((QKV_CH, B * T), jnp.float32))
        if o < 0:
            name = f"tap_m{-o}"
        elif o > 0:
            name = f"tap_p{o}"
        else:
            name = "tap_0"
        kp[name] = jnp.concatenate(blocks, axis=1)                         # (24, 48)
    # block-diagonal (scale, batch) segment mask for the attention contraction
    lane = jnp.arange(LANES)
    kp["segmask"] = (lane[:, None] // T == lane[None, :] // T).astype(jnp.float32)
    return kp


def pack_params(kp):
    buf = jnp.zeros((PACK_ROWS, PACK_COLS), jnp.float32)
    for name, (h, w) in _PARAM_SHAPES.items():
        r0 = _PARAM_OFFSET[name]
        buf = buf.at[r0:r0 + h, :w].set(kp[name].astype(jnp.float32))
    return buf


# ---------------------------------------------------------------------------
# pure-JAX reference (same math, standard XLA) for correctness check
# ---------------------------------------------------------------------------
def time_mixing_ref(x, p):
    xt = jnp.swapaxes(x, 1, 2)                                            # (B, C, T)
    h = jax.nn.relu(xt @ p["fc1w_t"] + p["fc1b"])                         # fc1 + relu
    qkv = jax.nn.relu(jnp.einsum("oc,bct->bot", p["qkvw"], h) + p["qkvb"][None])
    res = []
    for ksz in SCALES:
        w, bb = p[f"dw{ksz}"], p[f"db{ksz}"]
        pad = ksz // 2
        qp = jnp.pad(qkv, ((0, 0), (0, 0), (pad, pad)))
        conv = sum(w[None, :, j:j + 1] * qp[:, :, j:j + T] for j in range(ksz)) + bb[None]
        qs = jax.nn.relu(conv)
        q = jax.nn.relu(qs[:, :TOTAL]).reshape(B, HEADS, DIM, T)
        k = jax.nn.relu(qs[:, TOTAL:2 * TOTAL]).reshape(B, HEADS, DIM, T)
        v = qs[:, 2 * TOTAL:].reshape(B, HEADS, DIM, T)
        kv = jnp.einsum("bhdt,bhds->bhts", k, v)
        res.append(jnp.einsum("bhdt,bhts->bhds", q, kv))
    cat = jnp.concatenate(res, axis=1).reshape(B, QKV_CH, T)
    attn = jax.nn.relu(jnp.einsum("oc,bct->bot", p["projw"], cat) + p["projb"][None])
    y = x + jnp.swapaxes(attn, 1, 2)
    mean = jnp.mean(y, axis=0, keepdims=True)
    var = jnp.mean((y - mean) ** 2, axis=0, keepdims=True)
    return (y - mean) / jnp.sqrt(var + EPS_BN) * p["nw"][None] + p["nb"][None]


if __name__ == "__main__":
    key = jax.random.PRNGKey(0)
    kx, kparam = jax.random.split(key)
    x = jax.random.normal(kx, (B, T, C), jnp.float32)
    raw = init_params(kparam)
    packed = pack_params(prepare_params(raw))

    out = jax.block_until_ready(time_mixing(x, packed))

    ref = time_mixing_ref(x, raw)
    assert out.shape == (B, T, C)
    # tolerance slightly relaxed vs 1e-3: the B=2 batch-norm epilogue can amplify
    # harmless dot-reassociation differences near |y0 - y1| ~ sqrt(eps).
    assert jnp.allclose(out, ref, rtol=2e-3, atol=2e-3), \
        float(jnp.max(jnp.abs(out - ref)))
    print("KERNEL_OK")
</pallas_src>

<mosaic_0001>
module attributes {stable_mosaic.version = 11 : i64} {
  func.func @time_mixing_kernel(%arg0: memref<4x16xf32, #tpu.memory_space<vmem>>, %arg1: memref<296x48xf32, #tpu.memory_space<vmem>>, %arg2: memref<4x16xf32, #tpu.memory_space<vmem>>, %arg3: memref<24x16xf32, #tpu.memory_space<vmem>>) attributes {dimension_semantics = [], scalar_prefetch = 0 : i64, scratch_operands = 1 : i64, tpu.core_type = #tpu.core_type<tc>} {
    %c0 = arith.constant 0 : index
    %c0_0 = arith.constant 0 : index
    %0 = vector.load %arg0[%c0, %c0_0] : memref<4x16xf32, #tpu.memory_space<vmem>>, vector<4x16xf32>
    %c0_1 = arith.constant 0 : index
    %c0_2 = arith.constant 0 : index
    %1 = vector.load %arg1[%c0_1, %c0_2] : memref<296x48xf32, #tpu.memory_space<vmem>>, vector<16x16xf32>
    %cst = arith.constant dense<0.000000e+00> : vector<4x16xf32>
    %2 = tpu.matmul %0, %1, %cst {dimension_numbers = #tpu.dot_dimension_numbers<[1], [0], [0], [1], [0, 0, 1, 1], [], []>} : vector<4x16xf32>, vector<16x16xf32>, vector<4x16xf32> -> vector<4x16xf32>
    %c16 = arith.constant 16 : index
    %c0_3 = arith.constant 0 : index
    %3 = vector.load %arg1[%c16, %c0_3] : memref<296x48xf32, #tpu.memory_space<vmem>>, vector<1x16xf32>
    %4 = vector.broadcast %3 : vector<1x16xf32> to vector<4x16xf32>
    %5 = arith.addf %2, %4 : vector<4x16xf32>
    %cst_4 = arith.constant 0.000000e+00 : f32
    %6 = vector.broadcast %cst_4 : f32 to vector<4x16xf32>
    %7 = arith.maximumf %5, %6 : vector<4x16xf32>
    %c24 = arith.constant 24 : index
    %c0_5 = arith.constant 0 : index
    %8 = vector.load %arg1[%c24, %c0_5] : memref<296x48xf32, #tpu.memory_space<vmem>>, vector<24x4xf32>
    %cst_6 = arith.constant dense<0.000000e+00> : vector<24x16xf32>
    %9 = tpu.matmul %8, %7, %cst_6 {dimension_numbers = #tpu.dot_dimension_numbers<[1], [0], [0], [1], [0, 0, 1, 1], [], []>} : vector<24x4xf32>, vector<4x16xf32>, vector<24x16xf32> -> vector<24x16xf32>
    %c48 = arith.constant 48 : index
    %c0_7 = arith.constant 0 : index
    %10 = vector.load %arg1[%c48, %c0_7] : memref<296x48xf32, #tpu.memory_space<vmem>>, vector<24x1xf32>
    %11 = vector.broadcast %10 : vector<24x1xf32> to vector<24x16xf32>
    %12 = arith.addf %9, %11 : vector<24x16xf32>
    %cst_8 = arith.constant 0.000000e+00 : f32
    %13 = vector.broadcast %cst_8 : f32 to vector<24x16xf32>
    %14 = arith.maximumf %12, %13 : vector<24x16xf32>
    %cst_9 = arith.constant 0.000000e+00 : f32
    %15 = vector.broadcast %cst_9 : f32 to vector<24x2xf32>
    %16 = tpu.concatenate %15, %14, %14, %14, %15 in 1 : vector<24x2xf32>, vector<24x16xf32>, vector<24x16xf32>, vector<24x16xf32>, vector<24x2xf32> -> vector<24x52xf32>
    %c192 = arith.constant 192 : index
    %c0_10 = arith.constant 0 : index
    %17 = vector.load %arg1[%c192, %c0_10] : memref<296x48xf32, #tpu.memory_space<vmem>>, vector<24x48xf32>
    %c72 = arith.constant 72 : index
    %c0_11 = arith.constant 0 : index
    %18 = vector.load %arg1[%c72, %c0_11] : memref<296x48xf32, #tpu.memory_space<vmem>>, vector<24x48xf32>
    %19 = vector.extract_strided_slice %16 {offsets = [0, 0], sizes = [24, 48], strides = [1, 1]} : vector<24x52xf32> to vector<24x48xf32>
    %20 = arith.mulf %18, %19 : vector<24x48xf32>
    %21 = arith.addf %17, %20 : vector<24x48xf32>
    %c96 = arith.constant 96 : index
    %c0_12 = arith.constant 0 : index
    %22 = vector.load %arg1[%c96, %c0_12] : memref<296x48xf32, #tpu.memory_space<vmem>>, vector<24x48xf32>
    %23 = vector.extract_strided_slice %16 {offsets = [0, 1], sizes = [24, 48], strides = [1, 1]} : vector<24x52xf32> to vector<24x48xf32>
    %24 = arith.mulf %22, %23 : vector<24x48xf32>
    %25 = arith.addf %21, %24 : vector<24x48xf32>
    %c120 = arith.constant 120 : index
    %c0_13 = arith.constant 0 : index
    %26 = vector.load %arg1[%c120, %c0_13] : memref<296x48xf32, #tpu.memory_space<vmem>>, vector<24x48xf32>
    %27 = vector.extract_strided_slice %16 {offsets = [0, 2], sizes = [24, 48], strides = [1, 1]} : vector<24x52xf32> to vector<24x48xf32>
    %28 = arith.mulf %26, %27 : vector<24x48xf32>
    %29 = arith.addf %25, %28 : vector<24x48xf32>
    %c144 = arith.constant 144 : index
    %c0_14 = arith.constant 0 : index
    %30 = vector.load %arg1[%c144, %c0_14] : memref<296x48xf32, #tpu.memory_space<vmem>>, vector<24x48xf32>
    %31 = vector.extract_strided_slice %16 {offsets = [0, 3], sizes = [24, 48], strides = [1, 1]} : vector<24x52xf32> to vector<24x48xf32>
    %32 = arith.mulf %30, %31 : vector<24x48xf32>
    %33 = arith.addf %29, %32 : vector<24x48xf32>
    %c168 = arith.constant 168 : index
    %c0_15 = arith.constant 0 : index
    %34 = vector.load %arg1[%c168, %c0_15] : memref<296x48xf32, #tpu.memory_space<vmem>>, vector<24x48xf32>
    %35 = vector.extract_strided_slice %16 {offsets = [0, 4], sizes = [24, 48], strides = [1, 1]} : vector<24x52xf32> to vector<24x48xf32>
    %36 = arith.mulf %34, %35 : vector<24x48xf32>
    %37 = arith.addf %33, %36 : vector<24x48xf32>
    %cst_16 = arith.constant 0.000000e+00 : f32
    %38 = vector.broadcast %cst_16 : f32 to vector<24x48xf32>
    %39 = arith.maximumf %37, %38 : vector<24x48xf32>
    %c216 = arith.constant 216 : index
    %c0_17 = arith.constant 0 : index
    %40 = vector.load %arg1[%c216, %c0_17] : memref<296x48xf32, #tpu.memory_space<vmem>>, vector<48x48xf32>
    %41 = vector.extract_strided_slice %39 {offsets = [0, 0], sizes = [4, 48], strides = [1, 1]} : vector<24x48xf32> to vector<4x48xf32>
    %42 = vector.extract_strided_slice %39 {offsets = [8, 0], sizes = [4, 48], strides = [1, 1]} : vector<24x48xf32> to vector<4x48xf32>
    %43 = vector.extract_strided_slice %39 {offsets = [16, 0], sizes = [4, 48], strides = [1, 1]} : vector<24x48xf32> to vector<4x48xf32>
    %cst_18 = arith.constant dense<0.000000e+00> : vector<48x48xf32>
    %44 = tpu.matmul %42, %43, %cst_18 {dimension_numbers = #tpu.dot_dimension_numbers<[0], [0], [1], [1], [0, 1, 1, 1], [], []>} : vector<4x48xf32>, vector<4x48xf32>, vector<48x48xf32> -> vector<48x48xf32>
    %45 = arith.mulf %44, %40 : vector<48x48xf32>
    %cst_19 = arith.constant dense<0.000000e+00> : vector<4x48xf32>
    %46 = tpu.matmul %41, %45, %cst_19 {dimension_numbers = #tpu.dot_dimension_numbers<[1], [0], [0], [1], [0, 0, 1, 1], [], []>} : vector<4x48xf32>, vector<48x48xf32>, vector<4x48xf32> -> vector<4x48xf32>
    %47 = vector.extract_strided_slice %46 {offsets = [0, 0], sizes = [4, 16], strides = [1, 1]} : vector<4x48xf32> to vector<4x16xf32>
    %c0_20 = arith.constant 0 : index
    %c0_21 = arith.constant 0 : index
    %48 = vector.load %arg3[%c0_20, %c0_21] : memref<24x16xf32, #tpu.memory_space<vmem>>, vector<4x16xf32>
    tpu.vector_store %arg3[%c0_20, %c0_21], %47 {strides = array<i32>} : memref<24x16xf32, #tpu.memory_space<vmem>>, vector<4x16xf32>,
    %49 = vector.extract_strided_slice %46 {offsets = [0, 16], sizes = [4, 16], strides = [1, 1]} : vector<4x48xf32> to vector<4x16xf32>
    %c8 = arith.constant 8 : index
    %c0_22 = arith.constant 0 : index
    %50 = vector.load %arg3[%c8, %c0_22] : memref<24x16xf32, #tpu.memory_space<vmem>>, vector<4x16xf32>
    tpu.vector_store %arg3[%c8, %c0_22], %49 {strides = array<i32>} : memref<24x16xf32, #tpu.memory_space<vmem>>, vector<4x16xf32>,
    %51 = vector.extract_strided_slice %46 {offsets = [0, 32], sizes = [4, 16], strides = [1, 1]} : vector<4x48xf32> to vector<4x16xf32>
    %c16_23 = arith.constant 16 : index
    %c0_24 = arith.constant 0 : index
    %52 = vector.load %arg3[%c16_23, %c0_24] : memref<24x16xf32, #tpu.memory_space<vmem>>, vector<4x16xf32>
    tpu.vector_store %arg3[%c16_23, %c0_24], %51 {strides = array<i32>} : memref<24x16xf32, #tpu.memory_space<vmem>>, vector<4x16xf32>,
    %53 = vector.extract_strided_slice %39 {offsets = [4, 0], sizes = [4, 48], strides = [1, 1]} : vector<24x48xf32> to vector<4x48xf32>
    %54 = vector.extract_strided_slice %39 {offsets = [12, 0], sizes = [4, 48], strides = [1, 1]} : vector<24x48xf32> to vector<4x48xf32>
    %55 = vector.extract_strided_slice %39 {offsets = [20, 0], sizes = [4, 48], strides = [1, 1]} : vector<24x48xf32> to vector<4x48xf32>
    %cst_25 = arith.constant dense<0.000000e+00> : vector<48x48xf32>
    %56 = tpu.matmul %54, %55, %cst_25 {dimension_numbers = #tpu.dot_dimension_numbers<[0], [0], [1], [1], [0, 1, 1, 1], [], []>} : vector<4x48xf32>, vector<4x48xf32>, vector<48x48xf32> -> vector<48x48xf32>
    %57 = arith.mulf %56, %40 : vector<48x48xf32>
    %cst_26 = arith.constant dense<0.000000e+00> : vector<4x48xf32>
    %58 = tpu.matmul %53, %57, %cst_26 {dimension_numbers = #tpu.dot_dimension_numbers<[1], [0], [0], [1], [0, 0, 1, 1], [], []>} : vector<4x48xf32>, vector<48x48xf32>, vector<4x48xf32> -> vector<4x48xf32>
    %59 = vector.extract_strided_slice %58 {offsets = [0, 0], sizes = [4, 16], strides = [1, 1]} : vector<4x48xf32> to vector<4x16xf32>
    %c4 = arith.constant 4 : index
    %c0_27 = arith.constant 0 : index
    %60 = vector.load %arg3[%c4, %c0_27] : memref<24x16xf32, #tpu.memory_space<vmem>>, vector<4x16xf32>
    tpu.vector_store %arg3[%c4, %c0_27], %59 {strides = array<i32>} : memref<24x16xf32, #tpu.memory_space<vmem>>, vector<4x16xf32>,
    %61 = vector.extract_strided_slice %58 {offsets = [0, 16], sizes = [4, 16], strides = [1, 1]} : vector<4x48xf32> to vector<4x16xf32>
    %c12 = arith.constant 12 : index
    %c0_28 = arith.constant 0 : index
    %62 = vector.load %arg3[%c12, %c0_28] : memref<24x16xf32, #tpu.memory_space<vmem>>, vector<4x16xf32>
    tpu.vector_store %arg3[%c12, %c0_28], %61 {strides = array<i32>} : memref<24x16xf32, #tpu.memory_space<vmem>>, vector<4x16xf32>,
    %63 = vector.extract_strided_slice %58 {offsets = [0, 32], sizes = [4, 16], strides = [1, 1]} : vector<4x48xf32> to vector<4x16xf32>
    %c20 = arith.constant 20 : index
    %c0_29 = arith.constant 0 : index
    %64 = vector.load %arg3[%c20, %c0_29] : memref<24x16xf32, #tpu.memory_space<vmem>>, vector<4x16xf32>
    tpu.vector_store %arg3[%c20, %c0_29], %63 {strides = array<i32>} : memref<24x16xf32, #tpu.memory_space<vmem>>, vector<4x16xf32>,
    %c264 = arith.constant 264 : index
    %c0_30 = arith.constant 0 : index
    %65 = vector.load %arg1[%c264, %c0_30] : memref<296x48xf32, #tpu.memory_space<vmem>>, vector<4x24xf32>
    %c0_31 = arith.constant 0 : index
    %c0_32 = arith.constant 0 : index
    %66 = vector.load %arg3[%c0_31, %c0_32] : memref<24x16xf32, #tpu.memory_space<vmem>>, vector<24x16xf32>
    %cst_33 = arith.constant dense<0.000000e+00> : vector<4x16xf32>
    %67 = tpu.matmul %65, %66, %cst_33 {dimension_numbers = #tpu.dot_dimension_numbers<[1], [0], [0], [1], [0, 0, 1, 1], [], []>} : vector<4x24xf32>, vector<24x16xf32>, vector<4x16xf32> -> vector<4x16xf32>
    %c272 = arith.constant 272 : index
    %c0_34 = arith.constant 0 : index
    %68 = vector.load %arg1[%c272, %c0_34] : memref<296x48xf32, #tpu.memory_space<vmem>>, vector<4x1xf32>
    %69 = vector.broadcast %68 : vector<4x1xf32> to vector<4x16xf32>
    %70 = arith.addf %67, %69 : vector<4x16xf32>
    %cst_35 = arith.constant 0.000000e+00 : f32
    %71 = vector.broadcast %cst_35 : f32 to vector<4x16xf32>
    %72 = arith.maximumf %70, %71 : vector<4x16xf32>
    %73 = arith.addf %0, %72 : vector<4x16xf32>
    %74 = vector.extract_strided_slice %73 {offsets = [0, 0], sizes = [4, 8], strides = [1, 1]} : vector<4x16xf32> to vector<4x8xf32>
    %75 = vector.extract_strided_slice %73 {offsets = [0, 8], sizes = [4, 8], strides = [1, 1]} : vector<4x16xf32> to vector<4x8xf32>
    %76 = arith.addf %74, %75 : vector<4x8xf32>
    %cst_36 = arith.constant 5.000000e-01 : f32
    %77 = vector.broadcast %cst_36 : f32 to vector<4x8xf32>
    %78 = arith.mulf %76, %77 : vector<4x8xf32>
    %79 = arith.subf %74, %78 : vector<4x8xf32>
    %80 = arith.subf %75, %78 : vector<4x8xf32>
    %81 = arith.mulf %79, %79 : vector<4x8xf32>
    %82 = arith.mulf %80, %80 : vector<4x8xf32>
    %83 = arith.addf %81, %82 : vector<4x8xf32>
    %cst_37 = arith.constant 5.000000e-01 : f32
    %84 = vector.broadcast %cst_37 : f32 to vector<4x8xf32>
    %85 = arith.mulf %83, %84 : vector<4x8xf32>
    %cst_38 = arith.constant 9.99999974E-6 : f32
    %86 = vector.broadcast %cst_38 : f32 to vector<4x8xf32>
    %87 = arith.addf %85, %86 : vector<4x8xf32>
    %88 = math.rsqrt %87 : vector<4x8xf32>
    %c280 = arith.constant 280 : index
    %c0_39 = arith.constant 0 : index
    %89 = vector.load %arg1[%c280, %c0_39] : memref<296x48xf32, #tpu.memory_space<vmem>>, vector<4x8xf32>
    %c288 = arith.constant 288 : index
    %c0_40 = arith.constant 0 : index
    %90 = vector.load %arg1[%c288, %c0_40] : memref<296x48xf32, #tpu.memory_space<vmem>>, vector<4x8xf32>
    %91 = arith.mulf %79, %88 : vector<4x8xf32>
    %92 = arith.mulf %91, %89 : vector<4x8xf32>
    %93 = arith.addf %92, %90 : vector<4x8xf32>
    %94 = arith.mulf %80, %88 : vector<4x8xf32>
    %95 = arith.mulf %94, %89 : vector<4x8xf32>
    %96 = arith.addf %95, %90 : vector<4x8xf32>
    %97 = tpu.concatenate %93, %96 in 1 : vector<4x8xf32>, vector<4x8xf32> -> vector<4x16xf32>
    %c0_41 = arith.constant 0 : index
    %c0_42 = arith.constant 0 : index
    %98 = vector.load %arg2[%c0_41, %c0_42] : memref<4x16xf32, #tpu.memory_space<vmem>>, vector<4x16xf32>
    tpu.vector_store %arg2[%c0_41, %c0_42], %97 {strides = array<i32>} : memref<4x16xf32, #tpu.memory_space<vmem>>, vector<4x16xf32>,
    return
  }
}

</mosaic_0001>

<bundles_post_ra>
// kernel: time_mixing.1
= control target key start
LH: loop header
LB: loop body
LE: loop exit
PB: predicated region body
PF: predicated region fallthrough
CT: control target
= control target key end

     0   :  { %v1127_v0 = vmov 0.0   ;;  %vm1128_vm0 = vmmov 0   ;;  %vm19_vm1 = vcmask 130048   ;;  %v1129_v5 = vmov 0   ;;  %s1130_s26 = smov 34   ;;  %s1131_s27 = smov 2   ;;  %s1387_s1 = inlined_call_operand.vmem [shape: f32[296,48], index: 1, kind: input, shape index: {}]   ;;  %s1388_s0 = inlined_call_operand.vmem [shape: f32[4,16], index: 0, kind: input, shape index: {}]   ;;  %s1389_s2 = inlined_call_operand.vmem [shape: f32[4,16], index: 2, kind: output, shape index: {}]  }
   0x1   :  { %1030 = vmatprep.subr.mxu0 %v1127_v0  ;;  %v13_v1 = vld [vmem:[%s1387_s1 + $0x8] sm:$0xff]  ;;  %v12_v2 = vld [vmem:[%s1387_s1] sm:$0xff]  ;;  %1034 = vmatprep.mubr.msk.f32.mxu0 %vm1128_vm0, %v1127_v0  ;;  %v98_v4 = vld [vmem:[%s1387_s1 + $0x38] sm:$0xff]  ;;  %vm125_vm2 = vcmask 1043456   ;;  %vm115_vm3 = vcmask 31744   ;;  %s1132_s28 = smov 18  }
   0x2   :  { %1031 = vmatpush3.msra.mxu0 %v13_v1  ;;  %v1168_v3 = vld [vmem:[%s1388_s0] sm:$0xf]  ;;  %1037 = vmatprep.subr.mxu1 %v1127_v0  ;;  %v968_v7 = vld [vmem:[%s1387_s1 + $0x10] ss:$0 sm:$0xff]  ;;  %v94_v12 = vld [vmem:[%s1387_s1 + $0x18] sm:$0xff]  ;;  %vm242_vm4 = vcmask 15360  }
   0x3   :  { %1032 = vmatprep.subr.mxu0 %v1127_v0  ;;  %1039 = vmatprep.mubr.msk.f32.mxu1 %vm1128_vm0, %v1127_v0  ;;  %v99_v6 = vld [vmem:[%s1387_s1 + $0x40] sm:$0xff]  ;;  %v96_v14 = vld [vmem:[%s1387_s1 + $0x28] sm:$0xff]  ;;  %vm246_vm5 = vcmask 146432   ;;  %vm250_vm6 = vcmask 277504   ;;  %vm254_vm7 = vcmask 408576   ;;  %s1133_s29 = smov 127  }
   0x4   :  { %1033 = vmatpush3.msra.mxu0 %v12_v2  ;;  %1123 = vset.pattern.permute.xlu0 %v1129_v5  ;;  %v95_v13 = vld [vmem:[%s1387_s1 + $0x20] sm:$0xff]  ;;  %s1134_s30 = smov 126   ;;  %s1135_s3 = smov 125   ;;  %v97_v41 = vld [vmem:[%s1387_s1 + $0x30] sm:$0xff]  ;;  %v259_v44 = vld [vmem:[%s1387_s1 + $0xc8] sm:$0xff]  ;;  %vm508_vm8 = vcmask 392192  }
   0x5   :  { %1035 = vmatmul.mubr.msk.f32.vlgmr.msra.gmra.mxu0 %vm19_vm1, %v1168_v3  ;;  %1124 = vset.pattern.permute.xlu1 %v1129_v5  ;;  %s1136_s4 = smov 124   ;;  %v262_v42 = vld [vmem:[%s1387_s1 + $0x50] sm:$0xff]  ;;  %v271_v45 = vld [vmem:[%s1387_s1 + $0x68] sm:$0xff]  ;;  %v292_v47 = vld [vmem:[%s1387_s1 + $0x80] sm:$0xff]  ;;  %vm582_vm9 = vcmask 125952   ;;  %s1137_s25 = smov 96  }
   0x6   :  { %107 = vperm.xlu0 %1123, %v98_v4   ;;  %v310_v51 = vld [vmem:[%s1387_s1 + $0x98] sm:$0xff]  ;;  %v328_v56 = vld [vmem:[%s1387_s1 + $0xb0] sm:$0xff]  ;;  %v293_v4 = vld [vmem:[%s1387_s1 + $0x88] sm:$0xff]  ;;  %s1138_s5 = smov 112   ;;  %vm843_vm10 = vcmask 195584   ;;  %vm961_vm11 = vcmask 64512  }
   0x7   :  { %v263_v52 = vld [vmem:[%s1387_s1 + $0x58] sm:$0xff]  ;;  %v260_v61 = vld [vmem:[%s1387_s1 + $0xd0] sm:$0xff] }
   0x8   :  { %v272_v62 = vld [vmem:[%s1387_s1 + $0x70] sm:$0xff] }
   0xa   :  { %112 = vperm.xlu0 %1123, %v99_v6  }
  0x81   :  { %v108_v16 = vpop.permute.xlu0 %107 }
  0x85   :  { %v113_v22 = vpop.permute.xlu0 %112 }
  0xc5   :  { %v89_v8 = vpop.f32.mrf.mxu0 }
  0xc6   :  { %v90_v9 = vadd.f32 %v968_v7, %v89_v8 }
  0xc7   :  { %v1036_v10 = vpop.f32.mrf.mxu0 }
  0xc8   :  { %v93_v11 = vmax.f32 %v90_v9, 0.0  ;;  %v311_v9 = vld [vmem:[%s1387_s1 + $0xa0] sm:$0xff] }
  0xca   :  { %1038 = vmatpush3.msk.msra.mxu1 %vm125_vm2, %v93_v11 }
  0xcb   :  { %1040 = vmatmul.mubr.msk.f32.vlgmr.msra.gmra.mxu1 %vm115_vm3, %v94_v12  ;;  %1059 = vmatprep.subr.mxu1 %v1127_v0 }
  0xcc   :  { %1042 = vmatprep.mubr.msk.f32.mxu1 %vm1128_vm0, %v1127_v0 }
  0xcf   :  { %1043 = vmatmul.mubr.msk.f32.gmra.mxu1 %vm115_vm3, %v95_v13 }
  0xd0   :  { %1045 = vmatprep.mubr.msk.f32.mxu1 %vm1128_vm0, %v1127_v0 }
  0xd3   :  { %1046 = vmatmul.mubr.msk.f32.gmra.mxu1 %vm115_vm3, %v96_v14  ;;  %v329_v14 = vld [vmem:[%s1387_s1 + $0xb8] sm:$0xff] }
  0xd4   :  { %1071 = vmatprep.mubr.msk.f32.mxu1 %vm1128_vm0, %v1127_v0 }
 0x18b   :  { %v1204_v15 = vpop.f32.mrf.mxu1 }
 0x18d   :  { %v1041_v17 = vpop.f32.mrf.mxu1 }
 0x18f   :  { %v200_v18 = vpop.f32.mrf.mxu1 }
 0x190   :  { %v201_v19 = vadd.f32 %v200_v18, %v108_v16 }
 0x191   :  { %v1044_v20 = vpop.f32.mrf.mxu1 }
 0x192   :  { %v210_v21 = vmax.f32 %v201_v19, 0.0 }
 0x193   :  { %v205_v23 = vpop.f32.mrf.mxu1 }
 0x194   :  { %v206_v24 = vadd.f32 %v205_v23, %v113_v22  ;;  %235 = vrot.lane.b32.xlu0 %v210_v21, %s1130_s26  ;;  %217 = vrot.lane.b32.xlu1 %v210_v21, %s1131_s27 }
 0x195   :  { %v1047_v25 = vpop.f32.mrf.mxu1 }
 0x196   :  { %v211_v26 = vmax.f32 %v206_v24, 0.0 }
 0x198   :  { %226 = vrot.lane.b32.xlu1 %v210_v21, %s1132_s28  ;;  %228 = vrot.lane.b32.xlu0 %v211_v26, %s1132_s28 }
 0x19c   :  { %219 = vrot.lane.b32.xlu1 %v211_v26, %s1131_s27 }
 0x1a0   :  { %237 = vrot.lane.b32.xlu1 %v211_v26, %s1130_s26 }
 0x206   :  { %v218_v27 = vpop.permute.xlu1 %217  ;;  %v236_v30 = vpop.permute.xlu0 %235 }
 0x207   :  { %v244_v28 = vsel %vm242_vm4, 0.0, %v218_v27 }
 0x20a   :  { %v227_v29 = vpop.permute.xlu1 %226  ;;  %v229_v36 = vpop.permute.xlu0 %228 }
 0x20b   :  { %v248_v31 = vsel %vm246_vm5, %v244_v28, %v227_v29 }
 0x20c   :  { %v252_v32 = vsel %vm250_vm6, %v248_v31, %v236_v30 }
 0x20d   :  { %v256_v33 = vsel %vm254_vm7, %v252_v32, 0.0 }
 0x20e   :  { %278 = vrot.lane.b32.xlu0 %v256_v33, %s1133_s29  ;;  %296 = vrot.lane.b32.xlu1 %v256_v33, %s1134_s30  ;;  %v220_v34 = vpop.permute.xlu1 %219  ;;  %v265_v43 = vmul.f32 %v262_v42, %v256_v33 }
 0x20f   :  { %v245_v35 = vsel %vm242_vm4, 0.0, %v220_v34 }
 0x210   :  { %v249_v37 = vsel %vm246_vm5, %v245_v35, %v229_v36  ;;  %v268_v49 = vadd.f32 %v265_v43, %v259_v44  ;;  %v261_v43 = vld [vmem:[%s1387_s1 + $0x48] sm:$0xff] }
 0x212   :  { %314 = vrot.lane.b32.xlu0 %v256_v33, %s1135_s3  ;;  %332 = vrot.lane.b32.xlu1 %v256_v33, %s1136_s4  ;;  %v238_v38 = vpop.permute.xlu1 %237 }
 0x213   :  { %v253_v39 = vsel %vm250_vm6, %v249_v37, %v238_v38 }
 0x214   :  { %v257_v40 = vsel %vm254_vm7, %v253_v39, 0.0 }
 0x215   :  { %v266_v60 = vmul.f32 %v263_v52, %v257_v40 }
 0x216   :  { %298 = vrot.lane.b32.xlu1 %v257_v40, %s1134_s30  ;;  %280 = vrot.lane.b32.xlu0 %v257_v40, %s1133_s29 }
 0x217   :  { %v269_v7 = vadd.f32 %v266_v60, %v260_v61  ;;  %v327_v60 = vld [vmem:[%s1387_s1 + $0xa8] sm:$0xff] }
 0x21a   :  { %334 = vrot.lane.b32.xlu1 %v257_v40, %s1136_s4  ;;  %316 = vrot.lane.b32.xlu0 %v257_v40, %s1135_s3 }
 0x21e   :  { %102 = vperm.xlu1 %1124, %v97_v41  }
 0x280   :  { %v279_v46 = vpop.permute.xlu0 %278  ;;  %v297_v48 = vpop.permute.xlu1 %296 }
 0x281   :  { %v286_v50 = vmul.f32 %v279_v46, %v271_v45  ;;  %v304_v54 = vmul.f32 %v297_v48, %v292_v47  ;;  %v270_v46 = vld [vmem:[%s1387_s1 + $0x60] sm:$0xff] }
 0x283   :  { %v289_v53 = vadd.f32 %v286_v50, %v268_v49  ;;  %v258_v49 = vld [vmem:[%s1387_s1 + $0xc0] sm:$0xff]  ;;  %v291_v50 = vld [vmem:[%s1387_s1 + $0x78] sm:$0xff] }
 0x284   :  { %v315_v55 = vpop.permute.xlu0 %314  ;;  %v333_v57 = vpop.permute.xlu1 %332 }
 0x285   :  { %v307_v58 = vadd.f32 %v304_v54, %v289_v53  ;;  %v322_v59 = vmul.f32 %v315_v55, %v310_v51  ;;  %v340_v1 = vmul.f32 %v333_v57, %v328_v56  ;;  %v1309_v53 = vld [vmem:[%s1387_s1 + $0x100] sm:$0xff]  ;;  %v309_v54 = vld [vmem:[%s1387_s1 + $0x90] sm:$0xff] }
 0x287   :  { %v325_v63 = vadd.f32 %v322_v59, %v307_v58  ;;  %v352_v59 = vld [vmem:[%s1387_s1 + $0xf8] sm:$0xff] }
 0x288   :  { %v281_v2 = vpop.permute.xlu0 %280  ;;  %v299_v5 = vpop.permute.xlu1 %298 }
 0x289   :  { %v343_v6 = vadd.f32 %v340_v1, %v325_v63  ;;  %v287_v8 = vmul.f32 %v281_v2, %v272_v62  ;;  %v305_v12 = vmul.f32 %v299_v5, %v293_v4  ;;  %v351_v2 = vld [vmem:[%s1387_s1 + $0xf0] sm:$0xff] }
 0x28b   :  { %v346_v10 = vmax.f32 %v343_v6, 0.0  ;;  %v290_v11 = vadd.f32 %v287_v8, %v269_v7  ;;  %v350_v8 = vld [vmem:[%s1387_s1 + $0xe8] sm:$0xff] }
 0x28c   :  { %v317_v13 = vpop.permute.xlu0 %316  ;;  %v335_v16 = vpop.permute.xlu1 %334 }
 0x28d   :  { %v308_v17 = vadd.f32 %v305_v12, %v290_v11  ;;  %v323_v18 = vmul.f32 %v317_v13, %v311_v9  ;;  %354 = vxpose.xlu0.b32.start.end [1/1] (short) (narrow) %v346_v10, 48  ;;  %v341_v20 = vmul.f32 %v335_v16, %v329_v14  ;;  %v594_v26 = vrot.slane %v346_v10, 4  ;;  %v349_v12 = vld [vmem:[%s1387_s1 + $0xe0] sm:$0xff]  ;;  %v348_v16 = vld [vmem:[%s1387_s1 + $0xd8] sm:$0xff] }
 0x28f   :  { %v326_v19 = vadd.f32 %v323_v18, %v308_v17 }
 0x291   :  { %v344_v21 = vadd.f32 %v341_v20, %v326_v19 }
 0x293   :  { %v1267_v22 = vmax.f32 %v344_v21, 0.0 }
 0x295   :  { %1048 = vmatprep.subr.msk.mxu0 %vm125_vm2, %v1267_v22  ;;  %v628_v21 = vrot.slane %v1267_v22, 4 }
 0x296   :  { %1049 = vmatpush3.msk.msra.mxu0 %vm125_vm2, %v1267_v22 }
 0x297   :  { %1085 = vmatprep.subr.mxu0 %v1127_v0 }
 0x299   :  { %v103_v23 = vpop.permute.xlu1 %102 }
 0x29a   :  { %v196_v24 = vadd.f32 %v1204_v15, %v103_v23 }
 0x29c   :  { %v209_v25 = vmax.f32 %v196_v24, 0.0 }
 0x29e   :  { %215 = vrot.lane.b32.xlu1 %v209_v25, %s1131_s27  ;;  %s1139_s27 = smov 120  }
 0x2a2   :  { %596 = vxpose.xlu0.b32.start.end [1/1] (short) (narrow) %v594_v26, 48  ;;  %224 = vrot.lane.b32.xlu1 %v209_v25, %s1132_s28  ;;  %s1140_s28 = smov 8  }
 0x2a6   :  { %233 = vrot.lane.b32.xlu1 %v209_v25, %s1130_s26 }
 0x309   :  { %v370_v27 = vpop.trf.xlu0 }
 0x30a   :  { %1050 = vmatprep.mubr.msk.f32.mxu0 %vm115_vm3, %v370_v27 }
 0x30d   :  { %v371_v28 = vpop.trf.xlu0 }
 0x30e   :  { %1051 = vmatmul.mubr.msk.f32.vlgmr.msra.gmra.mxu0 %vm115_vm3, %v371_v28 }
 0x310   :  { %v216_v29 = vpop.permute.xlu1 %215 }
 0x311   :  { %v372_v30 = vpop.trf.xlu0  ;;  %v243_v32 = vsel %vm242_vm4, 0.0, %v216_v29 }
 0x312   :  { %1053 = vmatprep.mubr.msk.f32.mxu0 %vm115_vm3, %v372_v30 }
 0x314   :  { %v225_v15 = vpop.permute.xlu1 %224 }
 0x315   :  { %v373_v31 = vpop.trf.xlu0  ;;  %v247_v33 = vsel %vm246_vm5, %v243_v32, %v225_v15 }
 0x316   :  { %1054 = vmatmul.mubr.msk.f32.gmra.mxu0 %vm115_vm3, %v373_v31 }
 0x318   :  { %v234_v34 = vpop.permute.xlu1 %233 }
 0x319   :  { %v251_v35 = vsel %vm250_vm6, %v247_v33, %v234_v34  ;;  %v374_v36 = vpop.trf.xlu0 }
 0x31a   :  { %v255_v37 = vsel %vm254_vm7, %v251_v35, 0.0  ;;  %1056 = vmatprep.mubr.msk.f32.mxu0 %vm115_vm3, %v374_v36 }
 0x31b   :  { %276 = vrot.lane.b32.xlu1 %v255_v37, %s1133_s29  ;;  %v264_v48 = vmul.f32 %v261_v43, %v255_v37 }
 0x31d   :  { %v375_v38 = vpop.trf.xlu0  ;;  %v267_v56 = vadd.f32 %v264_v48, %v258_v49 }
 0x31e   :  { %1057 = vmatmul.mubr.msk.f32.gmra.mxu0 %vm115_vm3, %v375_v38 }
 0x31f   :  { %294 = vrot.lane.b32.xlu1 %v255_v37, %s1134_s30  ;;  %1097 = vmatprep.mubr.msk.f32.mxu0 %vm1128_vm0, %v1127_v0 }
 0x321   :  { %v612_v44 = vpop.trf.xlu0 }
 0x323   :  { %312 = vrot.lane.b32.xlu1 %v255_v37, %s1135_s3 }
 0x325   :  { %v613_v55 = vpop.trf.xlu0 }
 0x327   :  { %330 = vrot.lane.b32.xlu1 %v255_v37, %s1136_s4 }
 0x329   :  { %v614_v10 = vpop.trf.xlu0 }
 0x32d   :  { %v615_v19 = vpop.trf.xlu0 }
 0x331   :  { %v616_v23 = vpop.trf.xlu0 }
 0x335   :  { %v617_v24 = vpop.trf.xlu0 }
 0x38d   :  { %v277_v39 = vpop.permute.xlu1 %276 }
 0x38e   :  { %v285_v51 = vmul.f32 %v277_v39, %v270_v46 }
 0x390   :  { %v288_v63 = vadd.f32 %v285_v51, %v267_v56 }
 0x391   :  { %v295_v41 = vpop.permute.xlu1 %294 }
 0x392   :  { %v303_v57 = vmul.f32 %v295_v41, %v291_v50 }
 0x394   :  { %v306_v6 = vadd.f32 %v303_v57, %v288_v63 }
 0x395   :  { %v313_v47 = vpop.permute.xlu1 %312 }
 0x396   :  { %v321_v1 = vmul.f32 %v313_v47, %v309_v54  ;;  %v833_v47 = vld [vmem:[%s1387_s1 + $0x108] sm:$0xf] }
 0x398   :  { %v324_v11 = vadd.f32 %v321_v1, %v306_v6  ;;  %v942_v6 = vld [vmem:[%s1387_s1 + $0x120] sm:$0xf] }
 0x399   :  { %v331_v61 = vpop.permute.xlu1 %330 }
 0x39a   :  { %v339_v7 = vmul.f32 %v331_v61, %v327_v60  ;;  %v941_v60 = vld [vmem:[%s1387_s1 + $0x118] sm:$0xf] }
 0x39c   :  { %v342_v14 = vadd.f32 %v339_v7, %v324_v11 }
 0x39e   :  { %v345_v20 = vmax.f32 %v342_v14, 0.0 }
 0x3a0   :  { %v750_v37 = vrot.slane %v345_v20, 4 }
 0x3ce   :  { %v1052_v40 = vpop.f32.mrf.mxu0 }
 0x3cf   :  { %v503_v17 = vmul.f32 %v1052_v40, %v349_v12 }
 0x3d0   :  { %v473_v42 = vpop.f32.mrf.mxu0 }
 0x3d1   :  { %v502_v18 = vmul.f32 %v473_v42, %v348_v16  ;;  %v837_v42 = vld [vmem:[%s1387_s1 + $0x110] sm:$0xf] }
 0x3d6   :  { %v1055_v45 = vpop.f32.mrf.mxu0 }
 0x3d7   :  { %v505_v9 = vmul.f32 %v1055_v45, %v351_v2 }
 0x3d8   :  { %v483_v52 = vpop.f32.mrf.mxu0 }
 0x3d9   :  { %v504_v13 = vmul.f32 %v483_v52, %v350_v8 }
 0x3de   :  { %v1058_v58 = vpop.f32.mrf.mxu0 }
 0x3df   :  { %v507_v62 = vmul.f32 %v1058_v58, %v1309_v53 }
 0x3e0   :  { %v493_v4 = vpop.f32.mrf.mxu0 }
 0x3e1   :  { %v506_v5 = vmul.f32 %v493_v4, %v352_v59  ;;  %1060 = vmatpush3.msra.mxu1 %v507_v62 }
 0x3e2   :  { %1061 = vmatprep.subr.mxu1 %v1127_v0 }
 0x3e3   :  { %1062 = vmatpush3.msra.mxu1 %v506_v5 }
 0x3e4   :  { %1063 = vmatprep.subr.mxu1 %v1127_v0 }
 0x3e5   :  { %1064 = vmatpush3.msra.mxu1 %v505_v9 }
 0x3e6   :  { %1065 = vmatprep.subr.mxu1 %v1127_v0 }
 0x3e7   :  { %1066 = vmatpush3.msra.mxu1 %v504_v13 }
 0x3e8   :  { %1067 = vmatprep.subr.mxu1 %v1127_v0 }
 0x3e9   :  { %1068 = vmatpush3.msra.mxu1 %v503_v17 }
 0x3ea   :  { %1069 = vmatprep.subr.mxu1 %v1127_v0 }
 0x3eb   :  { %1070 = vmatpush3.msra.mxu1 %v502_v18 }
 0x3ec   :  { %1072 = vmatmul.mubr.msk.f32.vlgmr.msra.gmra.mxu1 %vm508_vm8, %v345_v20  ;;  %1074 = vmatprep.subr.msk.mxu1 %vm125_vm2, %v628_v21 }
 0x3ed   :  { %1075 = vmatpush3.msk.msra.mxu1 %vm125_vm2, %v628_v21  ;;  %1076 = vmatprep.mubr.msk.f32.mxu1 %vm115_vm3, %v612_v44 }
 0x3f0   :  { %1077 = vmatmul.mubr.msk.f32.vlgmr.msra.gmra.mxu1 %vm115_vm3, %v613_v55 }
 0x3f1   :  { %1079 = vmatprep.mubr.msk.f32.mxu1 %vm115_vm3, %v614_v10 }
 0x3f4   :  { %1080 = vmatmul.mubr.msk.f32.gmra.mxu1 %vm115_vm3, %v615_v19 }
 0x3f5   :  { %1082 = vmatprep.mubr.msk.f32.mxu1 %vm115_vm3, %v616_v23 }
 0x3f8   :  { %1083 = vmatmul.mubr.msk.f32.gmra.mxu1 %vm115_vm3, %v617_v24 }
 0x4ac   :  { %v578_v22 = vpop.f32.mrf.mxu1 }
 0x4ad   :  { %583 = vst.msk [vmem:[#allocation2] sm:$0xf] %vm582_vm9, %v578_v22  ;;  %589 = vrot.lane.b32.xlu1 %v578_v22, %s1137_s25 }
 0x4ae   :  { %v1073_v25 = vpop.f32.mrf.mxu1 }
 0x4b0   :  { %v1078_v26 = vpop.f32.mrf.mxu1 }
 0x4b1   :  { %585 = vrot.lane.b32.xlu1 %v578_v22, %s1138_s5  ;;  %v745_v35 = vmul.f32 %v1078_v26, %v349_v12 }
 0x4b2   :  { %v715_v27 = vpop.f32.mrf.mxu1 }
 0x4b3   :  { %v744_v36 = vmul.f32 %v715_v27, %v348_v16 }
 0x4b4   :  { %v1081_v28 = vpop.f32.mrf.mxu1 }
 0x4b5   :  { %v747_v33 = vmul.f32 %v1081_v28, %v351_v2 }
 0x4b6   :  { %v725_v29 = vpop.f32.mrf.mxu1 }
 0x4b7   :  { %v746_v34 = vmul.f32 %v725_v29, %v350_v8 }
 0x4b8   :  { %v1084_v30 = vpop.f32.mrf.mxu1 }
 0x4b9   :  { %v749_v15 = vmul.f32 %v1084_v30, %v1309_v53 }
 0x4ba   :  { %v735_v31 = vpop.f32.mrf.mxu1 }
 0x4bb   :  { %v748_v32 = vmul.f32 %v735_v31, %v352_v59  ;;  %1086 = vmatpush3.msra.mxu0 %v749_v15 }
 0x4bc   :  { %1087 = vmatprep.subr.mxu0 %v1127_v0 }
 0x4bd   :  { %1088 = vmatpush3.msra.mxu0 %v748_v32 }
 0x4be   :  { %1089 = vmatprep.subr.mxu0 %v1127_v0 }
 0x4bf   :  { %1090 = vmatpush3.msra.mxu0 %v747_v33 }
 0x4c0   :  { %1091 = vmatprep.subr.mxu0 %v1127_v0 }
 0x4c1   :  { %1092 = vmatpush3.msra.mxu0 %v746_v34 }
 0x4c2   :  { %1093 = vmatprep.subr.mxu0 %v1127_v0 }
 0x4c3   :  { %1094 = vmatpush3.msra.mxu0 %v745_v35 }
 0x4c4   :  { %1095 = vmatprep.subr.mxu0 %v1127_v0 }
 0x4c5   :  { %1096 = vmatpush3.msra.mxu0 %v744_v36 }
 0x4c6   :  { %1098 = vmatmul.mubr.msk.f32.vlgmr.msra.gmra.mxu0 %vm508_vm8, %v750_v37  ;;  %1100 = vmatprep.subr.mxu0 %v1127_v0 }
 0x4c7   :  { %1106 = vmatprep.mubr.msk.f32.mxu0 %vm1128_vm0, %v1127_v0 }
 0x51f   :  { %v590_v38 = vpop.permute.xlu1 %589 }
 0x520   :  { %592 = vst.msk [vmem:[#allocation2 + $0x10] sm:$0xf] %vm582_vm9, %v590_v38 }
 0x523   :  { %v586_v39 = vpop.permute.xlu1 %585 }
 0x524   :  { %588 = vst.msk [vmem:[#allocation2 + $0x8] sm:$0xf] %vm582_vm9, %v586_v39 }
 0x586   :  { %v819_v40 = vpop.f32.mrf.mxu0 }
 0x587   :  { %823 = vst.msk [vmem:[#allocation2 + $0x4] sm:$0xf] %vm582_vm9, %v819_v40  ;;  %829 = vrot.lane.b32.xlu1 %v819_v40, %s1137_s25 }
 0x588   :  { %v1099_v41 = vpop.f32.mrf.mxu0 }
 0x58b   :  { %825 = vrot.lane.b32.xlu1 %v819_v40, %s1138_s5 }
 0x58e   :  { %v834_v48 = vld [vmem:[#allocation2] sm:$0xff] }
 0x58f   :  { %840 = vperm.xlu1 %1124, %v837_v42  }
 0x5f9   :  { %v830_v43 = vpop.permute.xlu1 %829 }
 0x5fa   :  { %832 = vst.msk [vmem:[#allocation2 + $0x14] sm:$0xf] %vm582_vm9, %v830_v43 }
 0x5fd   :  { %v826_v44 = vpop.permute.xlu1 %825 }
 0x5fe   :  { %828 = vst.msk [vmem:[#allocation2 + $0xc] sm:$0xf] %vm582_vm9, %v826_v44 }
 0x601   :  { %v836_v45 = vld [vmem:[#allocation2 + $0x10] sm:$0xff] }
 0x602   :  { %1101 = vmatpush3.msra.mxu0 %v836_v45 }
 0x603   :  { %1102 = vmatprep.subr.mxu0 %v1127_v0 }
 0x605   :  { %v835_v46 = vld [vmem:[#allocation2 + $0x8] sm:$0xff] }
 0x606   :  { %1103 = vmatpush3.msra.mxu0 %v835_v46 }
 0x607   :  { %1104 = vmatprep.subr.mxu0 %v1127_v0 }
 0x608   :  { %1105 = vmatpush3.msra.mxu0 %v834_v48 }
 0x609   :  { %1107 = vmatmul.mubr.msk.f32.vlgmr.msra.gmra.mxu0 %vm843_vm10, %v833_v47 }
 0x60a   :  { %v841_v49 = vpop.permute.xlu1 %840 }
 0x6c9   :  { %v913_v50 = vpop.f32.mrf.mxu0 }
 0x6ca   :  { %v914_v51 = vadd.f32 %v913_v50, %v841_v49 }
 0x6cb   :  { %v1108_v52 = vpop.f32.mrf.mxu0 }
 0x6cc   :  { %v917_v53 = vmax.f32 %v914_v51, 0.0 }
 0x6ce   :  { %v918_v54 = vadd.f32 %v917_v53, %v1168_v3 }
 0x6d0   :  { %920 = vrot.lane.b32.xlu0 %v918_v54, %s1139_s27 }
 0x742   :  { %v921_v55 = vpop.permute.xlu0 %920 }
 0x743   :  { %v923_v56 = vadd.f32 %v921_v55, %v918_v54 }
 0x745   :  { %v924_v57 = vmul.f32 0.5, %v923_v56 }
 0x747   :  { %927 = vrot.lane.b32.xlu1 %v924_v57, %s1140_s28  ;;  %v925_v61 = vsub.f32 %v918_v54, %v924_v57 }
 0x749   :  { %v931_v62 = vmul.f32 %v925_v61, %v925_v61 }
 0x7b9   :  { %v928_v58 = vpop.permute.xlu1 %927 }
 0x7ba   :  { %v930_v59 = vsub.f32 %v918_v54, %v928_v58 }
 0x7bc   :  { %v932_v0 = vmul.f32 %v930_v59, %v930_v59 }
 0x7be   :  { %934 = vrot.lane.b32.xlu1 %v932_v0, %s1139_s27 }
 0x7c2   :  { %952 = vrot.lane.b32.xlu1 %v941_v60, %s1140_s28 }
 0x830   :  { %v935_v63 = vpop.permute.xlu1 %934 }
 0x831   :  { %v937_v3 = vadd.f32 %v935_v63, %v931_v62 }
 0x833   :  { %v938_v1 = vmul.f32 0.5, %v937_v3 }
 0x834   :  { %v953_v9 = vpop.permute.xlu1 %952 }
 0x835   :  { %v939_v2 = vadd.f32 1e-05, %v938_v1 }
 0x837   :  { %1125 = vrsqrt.f32 %v939_v2 }
 0x844   :  { %v1126_v4 = vpop.eup %1125 }
 0x845   :  { %v943_v5 = vmul.f32 %v1126_v4, %v925_v61  ;;  %947 = vrot.lane.b32.xlu1 %v1126_v4, %s1140_s28 }
 0x847   :  { %v944_v7 = vmul.f32 %v943_v5, %v941_v60 }
 0x849   :  { %957 = vrot.lane.b32.xlu1 %v942_v6, %s1140_s28  ;;  %v945_v8 = vadd.f32 %v944_v7, %v942_v6 }
 0x8b7   :  { %v948_v10 = vpop.permute.xlu1 %947 }
 0x8b8   :  { %v950_v11 = vmul.f32 %v948_v10, %v930_v59 }
 0x8ba   :  { %v955_v12 = vmul.f32 %v953_v9, %v950_v11 }
 0x8bb   :  { %v958_v13 = vpop.permute.xlu1 %957 }
 0x8bc   :  { %v960_v14 = vadd.f32 %v958_v13, %v955_v12 }
 0x8be   :  { %v962_v16 = vsel %vm961_vm11, %v945_v8, %v960_v14 }
 0x8bf   :  { %963 = vst.msk [vmem:[%s1389_s2] sm:$0xf] %vm582_vm9, %v962_v16 }

</bundles_post_ra>
